<compile_context>
chip_gen: v6e
topology: v6e:2x2x1
jax: 0.10.0
libtpu: 0.0.40
codegen_flags: <defaults>
</compile_context>

<pallas_src>
import functools

import jax
import jax.numpy as jnp
from jax.experimental import pallas as pl
from jax.experimental.pallas import tpu as pltpu


# ---------------------------------------------------------------------------
# In-kernel helper: separable bs x bs morphological dilation
# ---------------------------------------------------------------------------
def _dilated_drop_mask(mask_pad, block_size):
    """mask_pad: (ct, Hp, Wp) f32 in {0,1}, already zero padded by (bs-1) on
    every spatial edge (Hp = H + bs - 1, Wp = W + bs - 1).

    Returns dil: (ct, H, W) f32 in {0,1} with
        dil[h, w] = max_{di,dj in [0,bs)} mask_pad[h+di, w+dj]
    which reproduces the PyTorch scatter-of-bs*bs-blocks semantics.
    Separable: 2*(bs-1) maxes instead of bs^2-1.
    """
    bs = block_size
    _, Hp, Wp = mask_pad.shape
    H, W = Hp - (bs - 1), Wp - (bs - 1)

    # H pass: sublane-offset static slices (no concatenate, no zero buffers).
    row = mask_pad[:, 0:H, :]
    for d in range(1, bs):
        row = jnp.maximum(row, mask_pad[:, d:d + H, :])      # (ct, H, Wp)

    # W pass: lane-offset static slices.
    dil = row[:, :, 0:W]
    for d in range(1, bs):
        dil = jnp.maximum(dil, row[:, :, d:d + W])           # (ct, H, W)
    return dil


# ---------------------------------------------------------------------------
# Pass 1: dropped-element count per (batch, channel-tile)
# ---------------------------------------------------------------------------
def _count_kernel(mask_ref, out_ref, *, block_size):
    """mask_ref: (ct, Hp, Wp) int8; out_ref: (1, 1, 1) f32 dropped count."""
    dil = _dilated_drop_mask(mask_ref[...].astype(jnp.float32), block_size)
    out_ref[...] = jnp.sum(dil, axis=(0, 1, 2), keepdims=True)


# ---------------------------------------------------------------------------
# Pass 2: out = where(dropped, 0*scale, x*scale)   (scale: global SMEM scalar)
# ---------------------------------------------------------------------------
def _apply_kernel(x_ref, mask_ref, scale_ref, out_ref, *, block_size):
    """x_ref/out_ref: (ct, H, W); mask_ref: (ct, Hp, Wp) int8; scale in SMEM."""
    dil = _dilated_drop_mask(mask_ref[...].astype(jnp.float32), block_size)
    scale = scale_ref[0]
    # 0*scale == 0 normally; == NaN when count_ones == 0 (scale = inf), which
    # matches the PyTorch module's 0 * inf arithmetic in that degenerate case.
    dropped_val = 0.0 * scale
    out_ref[...] = jnp.where(dil > 0.0, dropped_val,
                             x_ref[...] * scale).astype(out_ref.dtype)


# ---------------------------------------------------------------------------
# Tiling heuristics (generation aware)
# ---------------------------------------------------------------------------
def _round_up(x, m):
    return ((x + m - 1) // m) * m


def _vmem_capacity_bytes():
    try:
        info = pltpu.get_tpu_info()
        cap = getattr(info, "vmem_capacity_bytes", None)
        if cap:
            return int(cap)
    except Exception:
        pass
    return 64 * 1024 * 1024   # conservative fallback (v7x-sized)


def _pick_channel_tile(B, C, H, W, bs, budget_bytes):
    """Largest divisor of C whose per-step VMEM footprint (double-buffered
    I/O + in-kernel dilation temporaries, with (8,128)/(32,128) layout
    padding) fits `budget_bytes`, then shrunk if needed so the grid has at
    least ~4 steps (v7x has 2 TensorCores)."""
    Hp, Wp = H + bs - 1, W + bs - 1
    w_lanes, wp_lanes = _round_up(W, 128), _round_up(Wp, 128)

    def vmem_bytes(ct):
        # Double-buffered pipeline I/O: x in, out, int8 padded mask in.
        x_tile = ct * _round_up(H, 8) * w_lanes * 4
        m_tile = ct * _round_up(Hp, 32) * wp_lanes          # int8 tiling
        io = 2 * (2 * x_tile + m_tile)
        # Single-buffered in-kernel temporaries: f32 mask, H-pass row,
        # dilated mask, + one tile of slack for the epilogue.
        tmp = ct * (_round_up(Hp, 8) * wp_lanes * 4
                    + _round_up(H, 8) * wp_lanes * 4
                    + 2 * _round_up(H, 8) * w_lanes * 4)
        return io + tmp

    divisors = [d for d in range(1, C + 1) if C % d == 0]
    fitting = [d for d in divisors if vmem_bytes(d) <= budget_bytes]
    ct = max(fitting) if fitting else 1
    # Keep >= 4 grid steps when possible: feeds both v7x TensorCores and keeps
    # the DMA/compute pipeline deep.  Cheap, since the op is HBM-bound.
    while B * (C // ct) < 4 and ct > 1:
        ct = max(d for d in divisors if d < ct)
    return ct


# ---------------------------------------------------------------------------
# Wrapper
# ---------------------------------------------------------------------------
def dropblock_forward(x, gamma, *, block_size, key, training=True):
    """DropBlock forward. x: (B, C, H, W) (NCHW, like the PyTorch module)."""
    if not training:
        return x

    B, C, H, W = x.shape
    bs = int(block_size)
    assert H >= bs and W >= bs, "spatial extent must be >= block_size"
    Hm, Wm = H - (bs - 1), W - (bs - 1)
    Hp, Wp = H + (bs - 1), W + (bs - 1)
    pad = bs - 1

    # Bernoulli(gamma) seed mask on the valid interior grid (same as torch),
    # pre-padded as int8 so the kernels need no in-register zero padding and
    # mask HBM traffic is 1/4 of an f32 mask.
    mask = jax.random.bernoulli(key, p=gamma, shape=(B, C, Hm, Wm))
    mask_pad = jnp.pad(mask.astype(jnp.int8),
                       ((0, 0), (0, 0), (pad, pad), (pad, pad)))

    cap = _vmem_capacity_bytes()
    ct = _pick_channel_tile(B, C, H, W, bs, budget_bytes=cap // 2)
    nct = C // ct
    grid = (B, nct)

    cparams = pltpu.CompilerParams(
        dimension_semantics=("parallel", "parallel"),
        vmem_limit_bytes=int(cap * 3 // 4),
    )

    elems = B * C * H * W
    mask_bytes = B * C * Hp * Wp
    count_cost = pl.CostEstimate(
        flops=elems * (2 * (bs - 1) + 1), transcendentals=0,
        bytes_accessed=mask_bytes + B * nct * 4)
    apply_cost = pl.CostEstimate(
        flops=elems * (2 * (bs - 1) + 3), transcendentals=0,
        bytes_accessed=2 * elems * x.dtype.itemsize + mask_bytes + 4)

    # ---- Pass 1: dropped counts per (batch, channel-tile) ----
    dropped = pl.pallas_call(
        functools.partial(_count_kernel, block_size=bs),
        out_shape=jax.ShapeDtypeStruct((B, nct, 1, 1), jnp.float32),
        grid=grid,
        in_specs=[
            pl.BlockSpec((None, ct, Hp, Wp), lambda b, c: (b, c, 0, 0)),
        ],
        out_specs=pl.BlockSpec((None, 1, 1, 1), lambda b, c: (b, c, 0, 0)),
        compiler_params=cparams,
        cost_estimate=count_cost,
    )(mask_pad)

    count_m = jnp.float32(B * C * H * W)
    count_ones = count_m - jnp.sum(dropped)
    # Division by zero -> inf (all positions dropped), same as PyTorch.
    scale = (count_m / count_ones).astype(jnp.float32).reshape(1)

    # ---- Pass 2: out = block_mask * x * scale, tiled over (B, C-tiles) ----
    out = pl.pallas_call(
        functools.partial(_apply_kernel, block_size=bs),
        out_shape=jax.ShapeDtypeStruct((B, C, H, W), x.dtype),
        grid=grid,
        in_specs=[
            pl.BlockSpec((None, ct, H, W), lambda b, c: (b, c, 0, 0)),
            pl.BlockSpec((None, ct, Hp, Wp), lambda b, c: (b, c, 0, 0)),
            pl.BlockSpec(memory_space=pltpu.MemorySpace.SMEM),
        ],
        out_specs=pl.BlockSpec((None, ct, H, W), lambda b, c: (b, c, 0, 0)),
        compiler_params=cparams,
        cost_estimate=apply_cost,
    )(x, mask_pad, scale)

    return out


# ---------------------------------------------------------------------------
# Pure-JAX reference (independent reduce_window dilation)
# ---------------------------------------------------------------------------
def _reference_forward(x, gamma, *, block_size, key):
    B, C, H, W = x.shape
    bs = block_size
    mask = jax.random.bernoulli(
        key, p=gamma, shape=(B, C, H - (bs - 1), W - (bs - 1))
    ).astype(jnp.float32)
    mpad = jnp.pad(mask, ((0, 0), (0, 0), (bs - 1, bs - 1), (bs - 1, bs - 1)))
    dil = jax.lax.reduce_window(
        mpad, 0.0, jax.lax.max, (1, 1, bs, bs), (1, 1, 1, 1), "VALID"
    )
    block_mask = 1.0 - dil
    count_m = float(B * C * H * W)
    count_ones = block_mask.sum()
    return block_mask * x * (count_m / count_ones)


if __name__ == "__main__":
    block_size = 3
    gamma = 0.1
    B, C, H, W = 2, 4, 16, 16

    key = jax.random.PRNGKey(0)
    kx, kmask = jax.random.split(key)
    x = jax.random.normal(kx, (B, C, H, W), dtype=jnp.float32)

    out = dropblock_forward(
        x, gamma, block_size=block_size, key=kmask, training=True
    )
    out = jax.block_until_ready(out)

    ref = _reference_forward(x, gamma, block_size=block_size, key=kmask)
    assert out.shape == x.shape and out.dtype == x.dtype
    assert jnp.allclose(out, ref, rtol=1e-5, atol=1e-5), "mismatch vs reference"

    # Eval-mode path (identity), sanity check.
    out_eval = dropblock_forward(
        x, gamma, block_size=block_size, key=kmask, training=False
    )
    assert jnp.array_equal(out_eval, x)

    print("KERNEL_OK")
</pallas_src>

<mosaic_0001>
module attributes {stable_mosaic.version = 11 : i64} {
  func.func @_count_kernel(%arg0: i32, %arg1: i32, %arg2: memref<1x2x18x18xi8, #tpu.memory_space<vmem>>, %arg3: memref<1x1x1x1xf32, #tpu.memory_space<vmem>>) attributes {dimension_semantics = [#tpu.dimension_semantics<parallel>, #tpu.dimension_semantics<parallel>], iteration_bounds = array<i64: 2, 2>, scalar_prefetch = 0 : i64, scratch_operands = 0 : i64, tpu.core_type = #tpu.core_type<tc>, window_params = [{transform_indices = @transform_0, window_bounds = array<i64: 1, 2, 18, 18>}, {transform_indices = @transform_1, window_bounds = array<i64: 1, 1, 1, 1>}]} {
    %c0 = arith.constant 0 : index
    %c0_0 = arith.constant 0 : index
    %c0_1 = arith.constant 0 : index
    %c0_2 = arith.constant 0 : index
    %0 = vector.load %arg2[%c0, %c0_0, %c0_1, %c0_2] : memref<1x2x18x18xi8, #tpu.memory_space<vmem>>, vector<1x2x18x18xi8>
    %1 = vector.shape_cast %0 : vector<1x2x18x18xi8> to vector<2x18x18xi8>
    %2 = arith.sitofp %1 : vector<2x18x18xi8> to vector<2x18x18xf32>
    %3 = vector.extract_strided_slice %2 {offsets = [0, 0, 0], sizes = [2, 16, 18], strides = [1, 1, 1]} : vector<2x18x18xf32> to vector<2x16x18xf32>
    %4 = vector.extract_strided_slice %2 {offsets = [0, 1, 0], sizes = [2, 16, 18], strides = [1, 1, 1]} : vector<2x18x18xf32> to vector<2x16x18xf32>
    %5 = arith.maximumf %3, %4 : vector<2x16x18xf32>
    %6 = vector.extract_strided_slice %2 {offsets = [0, 2, 0], sizes = [2, 16, 18], strides = [1, 1, 1]} : vector<2x18x18xf32> to vector<2x16x18xf32>
    %7 = arith.maximumf %5, %6 : vector<2x16x18xf32>
    %8 = vector.extract_strided_slice %7 {offsets = [0, 0, 0], sizes = [2, 16, 16], strides = [1, 1, 1]} : vector<2x16x18xf32> to vector<2x16x16xf32>
    %9 = vector.extract_strided_slice %7 {offsets = [0, 0, 1], sizes = [2, 16, 16], strides = [1, 1, 1]} : vector<2x16x18xf32> to vector<2x16x16xf32>
    %10 = arith.maximumf %8, %9 : vector<2x16x16xf32>
    %11 = vector.extract_strided_slice %7 {offsets = [0, 0, 2], sizes = [2, 16, 16], strides = [1, 1, 1]} : vector<2x16x18xf32> to vector<2x16x16xf32>
    %12 = arith.maximumf %10, %11 : vector<2x16x16xf32>
    %13 = vector.shape_cast %12 : vector<2x16x16xf32> to vector<1x2x16x16xf32>
    %cst = arith.constant dense<0.000000e+00> : vector<1xf32>
    %14 = vector.multi_reduction <add>, %13, %cst [1, 2, 3] : vector<1x2x16x16xf32> to vector<1xf32>
    %15 = vector.shape_cast %14 : vector<1xf32> to vector<1x1x1x1xf32>
    %16 = vector.extract %15[0, 0, 0, 0] : f32 from vector<1x1x1x1xf32>
    %17 = vector.broadcast %16 : f32 to vector<1x1x1xf32>
    %c0_3 = arith.constant 0 : index
    %c0_4 = arith.constant 0 : index
    %c0_5 = arith.constant 0 : index
    %c0_6 = arith.constant 0 : index
    %18 = vector.load %arg3[%c0_3, %c0_4, %c0_5, %c0_6] : memref<1x1x1x1xf32, #tpu.memory_space<vmem>>, vector<1x1x1x1xf32>
    %19 = vector.shape_cast %18 : vector<1x1x1x1xf32> to vector<1x1x1xf32>
    %20 = vector.shape_cast %17 : vector<1x1x1xf32> to vector<1x1x1x1xf32>
    tpu.vector_store %arg3[%c0_3, %c0_4, %c0_5, %c0_6], %20 {strides = array<i32>} : memref<1x1x1x1xf32, #tpu.memory_space<vmem>>, vector<1x1x1x1xf32>,
    return
  }
  func.func @transform_0(%arg0: i32, %arg1: i32) -> (i32, i32, i32, i32) {
    %c0_i32 = arith.constant 0 : i32
    %c0_i32_0 = arith.constant 0 : i32
    %c0_i32_1 = arith.constant 0 : i32
    return %arg0, %arg1, %c0_i32, %c0_i32_0 : i32, i32, i32, i32
  }
  func.func @transform_1(%arg0: i32, %arg1: i32) -> (i32, i32, i32, i32) {
    %c0_i32 = arith.constant 0 : i32
    %c0_i32_0 = arith.constant 0 : i32
    %c0_i32_1 = arith.constant 0 : i32
    return %arg0, %arg1, %c0_i32, %c0_i32_0 : i32, i32, i32, i32
  }
}

</mosaic_0001>

<bundles_post_ra>
// kernel: tpu_custom_call.1
= control target key start
LH: loop header
LB: loop body
LE: loop exit
PB: predicated region body
PF: predicated region fallthrough
CT: control target
= control target key end

     0   :  { %s467_s6 = smov 0   ;;  %s469_s7 = smov 0   ;;  %s535_s0 = inlined_call_operand.vmem [shape: s8[2,4,18,18], index: 0, kind: input, shape index: {}]   ;;  %s536_s1 = inlined_call_operand.vmem [shape: f32[2,2,1,1], index: 1, kind: output, shape index: {}]  }
   0x1   :  { %s471_s8 = smov 0   ;;  %s473_s9 = smov 0  }
   0x2   :  { %s475_s10 = smov 0  }
   0x3 LB: > { %s20_s11 = sadd.s32 1, %s445_s8  ;;  %s23_s12 = sadd.s32 1, %s449_s9  ;;  %s453_s10 = sphi %s475_s10, %s11_s10   ;;  %s449_s9 = sphi %s473_s9, %s540_s9   ;;  %s445_s8 = sphi %s471_s8, %s539_s8   ;;  %s441_s7 = sphi %s469_s7, %s538_s7   ;;  %s437_s6 = sphi %s467_s6, %s537_s6  }
   0x4   : > { %p21_p0 = scmp.ge.s32.totalorder %s20_s11, 2  ;;  %p359_p1 = scmp.ge.s32.totalorder %s453_s10, 1 }
   0x5   : > { %p109_p2 = scmp.lt.s32.totalorder %s453_s10, 5 }
   0x6   : > { %s542_s11 = smov (%p21_p0, %s20_s11), 0  ;;  %s544_s12 = smov (!%p21_p0, %s23_s12), %s449_s9 }
   0x7   : > { %p110_p3 = pnand %p359_p1, %p109_p2  ;;  %p25_p4 = scmp.ge.s32.totalorder %s544_s12, 2 }
   0x8   : > { %s360_s13 = sshll.u32 (!%p110_p3), %s437_s6, 1  ;;  %p137_p5 = scmp.lt.s32.totalorder (!%p110_p3), %s441_s7, 1 }
   0x9   : > { %s546_s12 = smov (%p25_p4, %s544_s12), 0  ;;  %113 = sbr.rel (%p110_p3) target bundleno = 370 (0x172), region = 24 }
   0xa   : > { %p139_p6 = scmp.lt.s32.totalorder (!%p110_p3), %s360_s13, 3  ;;  %s455_s21 = smov (!%p110_p3), 127  }
   0xb   : > { %s456_s22 = smov (!%p110_p3), 126   ;;  %p149_p7 = scmp.lt.s32.totalorder (!%p110_p3), %s437_s6, 1 }
   0xe   : > { %s548_s7 = smov (!%p137_p5, %s441_s7), 1  ;;  %s550_s13 = smov (!%p139_p6, %s360_s13), 3  ;;  %vm178_vm0 = vcmask 1046528   ;;  %vm197_vm1 = vcmask 1045504   ;;  %vm252_vm2 = vcmask 130048   ;;  %vm270_vm3 = vcmask 0  }
   0xf   : > { %s370_s14 = smul.u32 12, %s548_s7  ;;  %s552_s6 = smov (!%p149_p7, %s437_s6), 1 }
  0x10   : > { %s369_s15 = smul.u32 3, %s550_s13  ;;  %s362_s23 = sshll.u32 %s548_s7, 1 }
  0x11   : > { %s152_s24 = sadd.s32 %s362_s23, %s552_s6 }
  0x12   : > { %s143_s16 = sadd.s32 %s370_s14, %s369_s15  ;;  %s153_s27 = scalar_lea.vmem %s536_s1, %s152_s24 }
  0x13   : > { %s361_s17 = sshll.u32 %s143_s16, 1 }
  0x14   : > { %s145_s20 = scalar_lea.vmem %s535_s0, %s361_s17 }
  0x15   : > { %v157_v0 = vld [vmem:[%s145_s20] ss:$6 sps:$4 sm:$0xff]   ;;  %v156_v1 = vld [vmem:[%s145_s20 + $0x4] sm:$0x1]  ;;  %v159_v2 = vld [vmem:[%s145_s20 + $0xa] sm:$0x1] }
  0x16   : > { %v163_v3 = vunpack.c.2.s8 %v157_v0  ;;  %v164_v4 = vunpack.c.3.s8 %v157_v0  ;;  %v367_v5 = vunpack.c.0.s8 %v157_v0  ;;  %v368_v6 = vunpack.c.1.s8 %v157_v0 }
  0x17   : > { %v162_v7 = vunpack.c.0.s8 %v156_v1  ;;  %v165_v8 = vunpack.c.0.s8 %v159_v2 }
  0x18   : > { %v169_v9 = vcvt.s32.f32 %v163_v3  ;;  %v170_v10 = vcvt.s32.f32 %v164_v4  ;;  %v166_v11 = vcvt.s32.f32 %v367_v5  ;;  %v167_v12 = vcvt.s32.f32 %v368_v6 }
  0x19   : > { %v168_v13 = vcvt.s32.f32 %v162_v7  ;;  %v171_v14 = vcvt.s32.f32 %v165_v8 }
  0x1a   : > { %v184_v15 = vrot.slane %v169_v9, 1  ;;  %v185_v16 = vrot.slane %v170_v10, 1  ;;  %v203_v17 = vrot.slane %v169_v9, 2  ;;  %v204_v18 = vrot.slane %v170_v10, 2 }
  0x1b   : > { %v179_v19 = vrot.slane %v166_v11, 1  ;;  %v180_v20 = vrot.slane %v167_v12, 1  ;;  %v198_v21 = vrot.slane %v166_v11, 2  ;;  %v199_v22 = vrot.slane %v167_v12, 2 }
  0x1c   : > { %v186_v23 = vsel %vm178_vm0, %v184_v15, %v185_v16  ;;  %v205_v24 = vsel %vm197_vm1, %v203_v17, %v204_v18  ;;  %v182_v25 = vrot.slane %v168_v13, 1  ;;  %v201_v26 = vrot.slane %v168_v13, 2 }
  0x1d   : > { %v195_v27 = vmax.f32 %v169_v9, %v186_v23  ;;  %v181_v28 = vsel %vm178_vm0, %v179_v19, %v180_v20  ;;  %v200_v29 = vsel %vm197_vm1, %v198_v21, %v199_v22  ;;  %v187_v30 = vrot.slane %v171_v14, 1 }
  0x1e   : > { %v193_v31 = vmax.f32 %v166_v11, %v181_v28  ;;  %v183_v32 = vsel %vm178_vm0, %v180_v20, %v182_v25  ;;  %v206_v33 = vrot.slane %v171_v14, 2  ;;  %v202_v36 = vsel %vm197_vm1, %v199_v22, %v201_v26 }
  0x1f   : > { %v214_v34 = vmax.f32 %v195_v27, %v205_v24  ;;  %v194_v35 = vmax.f32 %v167_v12, %v183_v32  ;;  %v188_v37 = vsel %vm178_vm0, %v185_v16, %v187_v30 }
  0x20   : > { %v212_v38 = vmax.f32 %v193_v31, %v200_v29  ;;  %v196_v39 = vmax.f32 %v170_v10, %v188_v37  ;;  %v207_v41 = vsel %vm197_vm1, %v204_v18, %v206_v33 }
  0x21   : > { %224 = vrot.lane.b32.xlu1 %v214_v34, %s455_s21  ;;  %v213_v40 = vmax.f32 %v194_v35, %v202_v36 }
  0x22   : > { %220 = vrot.lane.b32.xlu0 %v212_v38, %s455_s21  ;;  %v215_v42 = vmax.f32 %v196_v39, %v207_v41 }
  0x25   : > { %236 = vrot.lane.b32.xlu1 %v212_v38, %s456_s22 }
  0x26   : > { %222 = vrot.lane.b32.xlu0 %v213_v40, %s455_s21 }
  0x29   : > { %226 = vrot.lane.b32.xlu1 %v215_v42, %s455_s21 }
  0x2a   : > { %238 = vrot.lane.b32.xlu0 %v213_v40, %s456_s22 }
  0x2d   : > { %242 = vrot.lane.b32.xlu1 %v215_v42, %s456_s22 }
  0x2e   : > { %240 = vrot.lane.b32.xlu0 %v214_v34, %s456_s22 }
  0x93   : > { %v225_v43 = vpop.permute.xlu1 %224 }
  0x94   : > { %v221_v44 = vpop.permute.xlu0 %220  ;;  %v234_v54 = vmax.f32 %v214_v34, %v225_v43 }
  0x95   : > { %v232_v47 = vmax.f32 %v212_v38, %v221_v44 }
  0x97   : > { %v237_v45 = vpop.permute.xlu1 %236 }
  0x98   : > { %v223_v46 = vpop.permute.xlu0 %222  ;;  %v248_v51 = vmax.f32 %v232_v47, %v237_v45 }
  0x99   : > { %v233_v48 = vmax.f32 %v213_v40, %v223_v46 }
  0x9a   : > { %v253_v58 = vsel %vm252_vm2, %v248_v51, 0.0 }
  0x9b   : > { %v227_v49 = vpop.permute.xlu1 %226 }
  0x9c   : > { %v239_v50 = vpop.permute.xlu0 %238  ;;  %v235_v52 = vmax.f32 %v215_v42, %v227_v49 }
  0x9d   : > { %v249_v53 = vmax.f32 %v233_v48, %v239_v50 }
  0x9f   : > { %v254_v55 = vsel %vm252_vm2, %v249_v53, 0.0  ;;  %v243_v56 = vpop.permute.xlu1 %242 }
  0xa0   : > { %v241_v57 = vpop.permute.xlu0 %240  ;;  %v251_v59 = vmax.f32 %v235_v52, %v243_v56  ;;  %v255_v61 = vadd.f32 %v254_v55, %v253_v58 }
  0xa1   : > { %v250_v60 = vmax.f32 %v234_v54, %v241_v57 }
  0xa2   : > { %v258_v0 = vsel %vm252_vm2, %v251_v59, 0.0 }
  0xa3   : > { %v256_v62 = vsel %vm252_vm2, %v250_v60, 0.0 }
  0xa4   : > { %v257_v63 = vadd.f32 %v256_v62, %v255_v61 }
  0xa6   : > { %v259_v1 = vadd.f32 %v258_v0, %v257_v63 }
  0xa8   : > { %260 = vadd.xlane.f32.xlu0 %v259_v1 }
 0x131   : > { %v261_v2 = vpop.xlane.xlu0 %260 }
 0x132   : > { %v262_v3 = vrot.slane %v261_v2, 4 }
 0x134   : > { %v263_v4 = vadd.f32 %v262_v3, %v261_v2 }
 0x136   : > { %v264_v5 = vrot.slane %v263_v4, 2 }
 0x138   : > { %v265_v6 = vadd.f32 %v264_v5, %v263_v4 }
 0x13a   : > { %v266_v7 = vrot.slane %v265_v6, 1 }
 0x13c   : > { %v267_v8 = vadd.f32 %v266_v7, %v265_v6 }
 0x13e   : > { %371 = vpush %v267_v8 }
 0x16f   : > { %s372_s28 = spop %371 }
 0x170   : > { %v269_v9 = vstv %s372_s28 }
 0x171   : > { %271 = vst.msk [vmem:[%s153_s27] sm:$0x1] %vm270_vm3, %v269_v9 }
 0x172 PF: > { %s11_s10 = sadd.s32 1, %s453_s10   ;;  %s537_s6 = smov %s445_s8 }
 0x173   : > { %p8_p8 = scmp.ge.s32.totalorder %s11_s10, 6   ;;  %s538_s7 = smov %s449_s9 }
 0x174   : > { %s539_s8 = smov %s542_s11  ;;  %s540_s9 = smov %s546_s12 }
 0x175   :  { %10 = sbr.rel (!%p8_p8) target bundleno = 3 (0x3), region = 54 }

</bundles_post_ra>
